<compile_context>
chip_gen: v7x
topology: tpu7x:2x2x1
jax: 0.10.0
libtpu: 0.0.40
codegen_flags: <defaults>
</compile_context>

<pallas_src>
import math

import jax
import jax.numpy as jnp
from jax import lax
from jax.experimental import pallas as pl
from jax.experimental.pallas import tpu as pltpu


# ----------------------------------------------------------------------------
# Pallas kernel: whole BasicBlock forward for one image (grid over batch,
# "parallel" so v7x can shard images across its 2 TensorCores).
# ----------------------------------------------------------------------------
def basic_block_kernel(x_ref, w1_ref, s1_ref, b1_ref, w2_ref, s2_ref, b2_ref,
                       out_ref, xp_ref, mp_ref):
    # x_ref  : (1, H, W*C)   fp32 activations in folded (lane-dense) layout
    # w*_ref : (3, W*C, W*C) banded binarized weights, bf16 values in {-1,0,+1}
    # s*/b*  : (1, W*C)      folded BN scale / bias (pre-tiled over W)
    # out_ref: (1, H, W*C)
    # xp_ref, mp_ref: (H+2, W*C) fp32 VMEM scratch (height-padded slabs)
    H = out_ref.shape[1]
    WC = out_ref.shape[2]

    # 1-row zero halo top/bottom (height padding).  Only 4 x (1, WC) stores per
    # grid step -- essentially free, and safe under "parallel" grid sharding
    # (no reliance on a program_id==0 init of persistent scratch).
    zrow = jnp.zeros((1, WC), jnp.float32)
    xp_ref[0:1, :] = zrow
    xp_ref[H + 1:H + 2, :] = zrow
    mp_ref[0:1, :] = zrow
    mp_ref[H + 1:H + 2, :] = zrow

    # ---- conv1: three row-shifted (H, WC) @ (WC, WC) MXU matmuls -------------
    xp_ref[1:H + 1, :] = x_ref[0]
    acc1 = jnp.zeros((H, WC), jnp.float32)
    for kh in range(3):
        acc1 = acc1 + jnp.dot(xp_ref[kh:kh + H, :],
                              w1_ref[kh].astype(jnp.float32),
                              preferred_element_type=jnp.float32)

    # ---- bn1 (weight power-of-two scale already folded into s1) + ReLU ------
    out1 = jnp.maximum(acc1 * s1_ref[...] + b1_ref[...], 0.0)

    # ---- conv2 ---------------------------------------------------------------
    mp_ref[1:H + 1, :] = out1
    acc2 = jnp.zeros((H, WC), jnp.float32)
    for kh in range(3):
        acc2 = acc2 + jnp.dot(mp_ref[kh:kh + H, :],
                              w2_ref[kh].astype(jnp.float32),
                              preferred_element_type=jnp.float32)

    # ---- bn2 + identity residual + ReLU --------------------------------------
    out_ref[0] = jnp.maximum(acc2 * s2_ref[...] + b2_ref[...] + x_ref[0], 0.0)


# ----------------------------------------------------------------------------
# Parameter preparation (plain JAX, one-time weight/BN preprocessing)
# ----------------------------------------------------------------------------
def irnet_binarize(w_oihw):
    """IR-Net 1w32a forward transform, split into sign part and p-o-2 scale:
       per-out-channel standardize -> sign(), scale = 2^round(log2(mean|bw|))."""
    co = w_oihw.shape[0]
    wf = w_oihw.reshape(co, -1)
    bw = wf - jnp.mean(wf, axis=-1, keepdims=True)
    bw = bw / jnp.std(bw, axis=-1, ddof=1, keepdims=True)   # torch .std() is unbiased
    sw = 2.0 ** jnp.round(jnp.log2(jnp.mean(jnp.abs(bw), axis=-1)))
    sign = jnp.sign(bw).reshape(w_oihw.shape)                # values in {-1, 0, +1}
    return sign, sw


def fold_bn(gamma, beta, mean, var, eps=1e-5):
    scale = gamma / jnp.sqrt(var + eps)
    bias = beta - mean * scale
    return scale, bias


def make_banded(w_sign_oihw, W):
    """(Cout, Cin, 3, 3) sign weights -> (3, W*Cin, W*Cout) banded matrices.

    BigW[kh][win*Cin + ci, w*Cout + co] = sign[co, ci, kh, kw] for the unique
    kw = win - w + 1 in {0, 1, 2} (zero otherwise); the zero band edges encode
    the 1-pixel zero padding along W.  conv(x)[h] = sum_kh xrow[h+kh-1] @ BigW[kh].
    """
    w_hwio = jnp.transpose(w_sign_oihw, (2, 3, 1, 0)).astype(jnp.float32)
    _, _, cin, cout = w_hwio.shape
    pos = jnp.arange(W)
    kw = jnp.arange(3)
    sel = (pos[None, :, None] == pos[None, None, :] + kw[:, None, None] - 1)
    big = jnp.einsum('xuw,yxio->yuiwo', sel.astype(jnp.float32), w_hwio)
    return big.reshape(3, W * cin, W * cout)


def prepare_params(w1, bn1, w2, bn2, W):
    """w*: OIHW fp32 latent weights; bn*: (gamma, beta, running_mean, running_var)."""
    sign1, sw1 = irnet_binarize(w1)
    sign2, sw2 = irnet_binarize(w2)
    # {-1, 0, +1} is exactly representable in bf16 -> lossless, half the DMA/VMEM.
    bw1 = make_banded(sign1, W).astype(jnp.bfloat16)
    bw2 = make_banded(sign2, W).astype(jnp.bfloat16)
    sc1, bi1 = fold_bn(*bn1)
    sc2, bi2 = fold_bn(*bn2)
    # Fold the power-of-two weight scale into the BN scale and tile per-channel
    # vectors over W to match the folded (H, W*C) layout.
    s1 = jnp.tile(sc1 * sw1, W).reshape(1, -1)
    b1 = jnp.tile(bi1, W).reshape(1, -1)
    s2 = jnp.tile(sc2 * sw2, W).reshape(1, -1)
    b2 = jnp.tile(bi2, W).reshape(1, -1)
    return bw1, s1, b1, bw2, s2, b2


# ----------------------------------------------------------------------------
# Wrapper: NCHW in / NCHW out
# ----------------------------------------------------------------------------
def basic_block_forward(x_nchw, bw1, s1, b1, bw2, s2, b2):
    x = jnp.transpose(x_nchw, (0, 2, 3, 1)).astype(jnp.float32)  # NCHW -> NHWC
    N, H, W, C = x.shape
    WC = W * C                                                   # 128 at demo size
    xf = x.reshape(N, H, WC)                                     # lane-dense fold

    # NOTE: at real ResNet34 channel counts, additionally set
    # pltpu.CompilerParams(vmem_limit_bytes=...) and single-buffer the
    # grid-invariant weight specs; not needed at demo size.
    out = pl.pallas_call(
        basic_block_kernel,
        out_shape=jax.ShapeDtypeStruct((N, H, WC), jnp.float32),
        grid_spec=pltpu.PrefetchScalarGridSpec(
            num_scalar_prefetch=0,
            grid=(N,),
            in_specs=[
                pl.BlockSpec((1, H, WC), lambda n: (n, 0, 0)),    # x (folded)
                pl.BlockSpec((3, WC, WC), lambda n: (0, 0, 0)),   # banded w1 (bf16)
                pl.BlockSpec((1, WC), lambda n: (0, 0)),          # s1
                pl.BlockSpec((1, WC), lambda n: (0, 0)),          # b1
                pl.BlockSpec((3, WC, WC), lambda n: (0, 0, 0)),   # banded w2 (bf16)
                pl.BlockSpec((1, WC), lambda n: (0, 0)),          # s2
                pl.BlockSpec((1, WC), lambda n: (0, 0)),          # b2
            ],
            out_specs=pl.BlockSpec((1, H, WC), lambda n: (n, 0, 0)),
            scratch_shapes=[pltpu.VMEM((H + 2, WC), jnp.float32),
                            pltpu.VMEM((H + 2, WC), jnp.float32)],
        ),
        compiler_params=pltpu.CompilerParams(
            dimension_semantics=("parallel",)),   # batch items independent -> 2x on v7x
    )(xf, bw1, s1, b1, bw2, s2, b2)

    return jnp.transpose(out.reshape(N, H, W, C), (0, 3, 1, 2))  # -> NCHW


# ----------------------------------------------------------------------------
# Pure-JAX reference (for correctness check only)
# ----------------------------------------------------------------------------
def reference_forward(x_nchw, w1, bn1, w2, bn2):
    def binarize(w):
        co = w.shape[0]
        wf = w.reshape(co, -1)
        bw = wf - jnp.mean(wf, axis=-1, keepdims=True)
        bw = bw / jnp.std(bw, axis=-1, ddof=1, keepdims=True)
        sw = 2.0 ** jnp.round(jnp.log2(jnp.mean(jnp.abs(bw), axis=-1)))
        return (jnp.sign(bw) * sw[:, None]).reshape(w.shape)

    def bn_apply(x, gamma, beta, mean, var, eps=1e-5):
        scale = gamma / jnp.sqrt(var + eps)
        return x * scale + (beta - mean * scale)

    x = jnp.transpose(x_nchw, (0, 2, 3, 1)).astype(jnp.float32)
    w1b = jnp.transpose(binarize(w1), (2, 3, 1, 0))
    w2b = jnp.transpose(binarize(w2), (2, 3, 1, 0))
    dn = lax.conv_dimension_numbers(x.shape, w1b.shape, ('NHWC', 'HWIO', 'NHWC'))
    o = lax.conv_general_dilated(x, w1b, (1, 1), 'SAME', dimension_numbers=dn)
    o = jnp.maximum(bn_apply(o, *bn1), 0.0)
    o = lax.conv_general_dilated(o, w2b, (1, 1), 'SAME', dimension_numbers=dn)
    o = bn_apply(o, *bn2)
    o = jnp.maximum(o + x, 0.0)
    return jnp.transpose(o, (0, 3, 1, 2))


if __name__ == "__main__":
    key = jax.random.PRNGKey(0)
    N, C, H, W = 2, 8, 16, 16      # inplanes == planes == 8, stride=1, downsample=None
    ks = jax.random.split(key, 12)

    x = jax.random.normal(ks[0], (N, C, H, W), jnp.float32)

    fan = 1.0 / math.sqrt(C * 3 * 3)
    w1 = jax.random.normal(ks[1], (C, C, 3, 3), jnp.float32) * fan  # OIHW latent weights
    w2 = jax.random.normal(ks[2], (C, C, 3, 3), jnp.float32) * fan

    bn1 = (jax.random.uniform(ks[3], (C,), minval=0.5, maxval=1.5),   # gamma
           jax.random.normal(ks[4], (C,)) * 0.1,                      # beta
           jax.random.normal(ks[5], (C,)) * 0.1,                      # running_mean
           jax.random.uniform(ks[6], (C,), minval=0.5, maxval=1.5))   # running_var
    bn2 = (jax.random.uniform(ks[7], (C,), minval=0.5, maxval=1.5),
           jax.random.normal(ks[8], (C,)) * 0.1,
           jax.random.normal(ks[9], (C,)) * 0.1,
           jax.random.uniform(ks[10], (C,), minval=0.5, maxval=1.5))

    params = prepare_params(w1, bn1, w2, bn2, W)

    out = basic_block_forward(x, *params)
    out = jax.block_until_ready(out)

    ref = reference_forward(x, w1, bn1, w2, bn2)
    assert out.shape == (N, C, H, W)
    assert jnp.allclose(out, ref, atol=2e-3, rtol=2e-3), "mismatch vs JAX reference"

    print("KERNEL_OK")
</pallas_src>

<mosaic_0001>
module attributes {stable_mosaic.version = 11 : i64} {
  func.func @basic_block_kernel(%arg0: i32, %arg1: memref<1x16x128xf32, #tpu.memory_space<vmem>>, %arg2: memref<3x128x128xbf16, #tpu.memory_space<vmem>>, %arg3: memref<1x128xf32, #tpu.memory_space<vmem>>, %arg4: memref<1x128xf32, #tpu.memory_space<vmem>>, %arg5: memref<3x128x128xbf16, #tpu.memory_space<vmem>>, %arg6: memref<1x128xf32, #tpu.memory_space<vmem>>, %arg7: memref<1x128xf32, #tpu.memory_space<vmem>>, %arg8: memref<1x16x128xf32, #tpu.memory_space<vmem>>, %arg9: memref<18x128xf32, #tpu.memory_space<vmem>>, %arg10: memref<18x128xf32, #tpu.memory_space<vmem>>) attributes {dimension_semantics = [#tpu.dimension_semantics<parallel>], iteration_bounds = array<i64: 2>, scalar_prefetch = 0 : i64, scratch_operands = 2 : i64, tpu.core_type = #tpu.core_type<tc>, window_params = [{transform_indices = @transform_0, window_bounds = array<i64: 1, 16, 128>}, {pipeline_mode = #tpu.pipeline_mode<synchronous>, transform_indices = @transform_1, window_bounds = array<i64: 3, 128, 128>}, {pipeline_mode = #tpu.pipeline_mode<synchronous>, transform_indices = @transform_2, window_bounds = array<i64: 1, 128>}, {pipeline_mode = #tpu.pipeline_mode<synchronous>, transform_indices = @transform_3, window_bounds = array<i64: 1, 128>}, {pipeline_mode = #tpu.pipeline_mode<synchronous>, transform_indices = @transform_4, window_bounds = array<i64: 3, 128, 128>}, {pipeline_mode = #tpu.pipeline_mode<synchronous>, transform_indices = @transform_5, window_bounds = array<i64: 1, 128>}, {pipeline_mode = #tpu.pipeline_mode<synchronous>, transform_indices = @transform_6, window_bounds = array<i64: 1, 128>}, {transform_indices = @transform_7, window_bounds = array<i64: 1, 16, 128>}]} {
    %cst = arith.constant 0.000000e+00 : f32
    %0 = vector.broadcast %cst : f32 to vector<1x128xf32>
    %c0 = arith.constant 0 : index
    %c0_0 = arith.constant 0 : index
    %1 = vector.load %arg9[%c0, %c0_0] : memref<18x128xf32, #tpu.memory_space<vmem>>, vector<1x128xf32>
    tpu.vector_store %arg9[%c0, %c0_0], %0 {strides = array<i32>} : memref<18x128xf32, #tpu.memory_space<vmem>>, vector<1x128xf32>,
    %c17 = arith.constant 17 : index
    %c0_1 = arith.constant 0 : index
    %2 = vector.load %arg9[%c17, %c0_1] : memref<18x128xf32, #tpu.memory_space<vmem>>, vector<1x128xf32>
    tpu.vector_store %arg9[%c17, %c0_1], %0 {strides = array<i32>} : memref<18x128xf32, #tpu.memory_space<vmem>>, vector<1x128xf32>,
    %c0_2 = arith.constant 0 : index
    %c0_3 = arith.constant 0 : index
    %3 = vector.load %arg10[%c0_2, %c0_3] : memref<18x128xf32, #tpu.memory_space<vmem>>, vector<1x128xf32>
    tpu.vector_store %arg10[%c0_2, %c0_3], %0 {strides = array<i32>} : memref<18x128xf32, #tpu.memory_space<vmem>>, vector<1x128xf32>,
    %c17_4 = arith.constant 17 : index
    %c0_5 = arith.constant 0 : index
    %4 = vector.load %arg10[%c17_4, %c0_5] : memref<18x128xf32, #tpu.memory_space<vmem>>, vector<1x128xf32>
    tpu.vector_store %arg10[%c17_4, %c0_5], %0 {strides = array<i32>} : memref<18x128xf32, #tpu.memory_space<vmem>>, vector<1x128xf32>,
    %c0_6 = arith.constant 0 : index
    %c0_7 = arith.constant 0 : index
    %c0_8 = arith.constant 0 : index
    %5 = vector.load %arg1[%c0_6, %c0_7, %c0_8] : memref<1x16x128xf32, #tpu.memory_space<vmem>>, vector<1x16x128xf32>
    %6 = vector.shape_cast %5 : vector<1x16x128xf32> to vector<16x128xf32>
    %c1 = arith.constant 1 : index
    %c0_9 = arith.constant 0 : index
    %7 = vector.load %arg9[%c1, %c0_9] : memref<18x128xf32, #tpu.memory_space<vmem>>, vector<16x128xf32>
    tpu.vector_store %arg9[%c1, %c0_9], %6 {strides = array<i32>} : memref<18x128xf32, #tpu.memory_space<vmem>>, vector<16x128xf32>,
    %cst_10 = arith.constant 0.000000e+00 : f32
    %8 = vector.broadcast %cst_10 : f32 to vector<16x128xf32>
    %c0_11 = arith.constant 0 : index
    %c0_12 = arith.constant 0 : index
    %9 = vector.load %arg9[%c0_11, %c0_12] : memref<18x128xf32, #tpu.memory_space<vmem>>, vector<16x128xf32>
    %c0_13 = arith.constant 0 : index
    %c0_14 = arith.constant 0 : index
    %c0_15 = arith.constant 0 : index
    %10 = vector.load %arg2[%c0_13, %c0_14, %c0_15] : memref<3x128x128xbf16, #tpu.memory_space<vmem>>, vector<1x128x128xbf16>
    %11 = vector.shape_cast %10 : vector<1x128x128xbf16> to vector<128x128xbf16>
    %12 = arith.extf %11 : vector<128x128xbf16> to vector<128x128xf32>
    %cst_16 = arith.constant dense<0.000000e+00> : vector<16x128xf32>
    %13 = tpu.matmul %9, %12, %cst_16 {dimension_numbers = #tpu.dot_dimension_numbers<[1], [0], [0], [1], [0, 0, 1, 1], [], []>} : vector<16x128xf32>, vector<128x128xf32>, vector<16x128xf32> -> vector<16x128xf32>
    %14 = arith.addf %8, %13 : vector<16x128xf32>
    %c1_17 = arith.constant 1 : index
    %c0_18 = arith.constant 0 : index
    %15 = vector.load %arg9[%c1_17, %c0_18] : memref<18x128xf32, #tpu.memory_space<vmem>>, vector<16x128xf32>
    %c1_19 = arith.constant 1 : index
    %c0_20 = arith.constant 0 : index
    %c0_21 = arith.constant 0 : index
    %16 = vector.load %arg2[%c1_19, %c0_20, %c0_21] : memref<3x128x128xbf16, #tpu.memory_space<vmem>>, vector<1x128x128xbf16>
    %17 = vector.shape_cast %16 : vector<1x128x128xbf16> to vector<128x128xbf16>
    %18 = arith.extf %17 : vector<128x128xbf16> to vector<128x128xf32>
    %cst_22 = arith.constant dense<0.000000e+00> : vector<16x128xf32>
    %19 = tpu.matmul %15, %18, %cst_22 {dimension_numbers = #tpu.dot_dimension_numbers<[1], [0], [0], [1], [0, 0, 1, 1], [], []>} : vector<16x128xf32>, vector<128x128xf32>, vector<16x128xf32> -> vector<16x128xf32>
    %20 = arith.addf %14, %19 : vector<16x128xf32>
    %c2 = arith.constant 2 : index
    %c0_23 = arith.constant 0 : index
    %21 = vector.load %arg9[%c2, %c0_23] : memref<18x128xf32, #tpu.memory_space<vmem>>, vector<16x128xf32>
    %c2_24 = arith.constant 2 : index
    %c0_25 = arith.constant 0 : index
    %c0_26 = arith.constant 0 : index
    %22 = vector.load %arg2[%c2_24, %c0_25, %c0_26] : memref<3x128x128xbf16, #tpu.memory_space<vmem>>, vector<1x128x128xbf16>
    %23 = vector.shape_cast %22 : vector<1x128x128xbf16> to vector<128x128xbf16>
    %24 = arith.extf %23 : vector<128x128xbf16> to vector<128x128xf32>
    %cst_27 = arith.constant dense<0.000000e+00> : vector<16x128xf32>
    %25 = tpu.matmul %21, %24, %cst_27 {dimension_numbers = #tpu.dot_dimension_numbers<[1], [0], [0], [1], [0, 0, 1, 1], [], []>} : vector<16x128xf32>, vector<128x128xf32>, vector<16x128xf32> -> vector<16x128xf32>
    %26 = arith.addf %20, %25 : vector<16x128xf32>
    %c0_28 = arith.constant 0 : index
    %c0_29 = arith.constant 0 : index
    %27 = vector.load %arg3[%c0_28, %c0_29] : memref<1x128xf32, #tpu.memory_space<vmem>>, vector<1x128xf32>
    %28 = vector.broadcast %27 : vector<1x128xf32> to vector<16x128xf32>
    %29 = arith.mulf %26, %28 : vector<16x128xf32>
    %c0_30 = arith.constant 0 : index
    %c0_31 = arith.constant 0 : index
    %30 = vector.load %arg4[%c0_30, %c0_31] : memref<1x128xf32, #tpu.memory_space<vmem>>, vector<1x128xf32>
    %31 = vector.broadcast %30 : vector<1x128xf32> to vector<16x128xf32>
    %32 = arith.addf %29, %31 : vector<16x128xf32>
    %cst_32 = arith.constant 0.000000e+00 : f32
    %33 = vector.broadcast %cst_32 : f32 to vector<16x128xf32>
    %34 = arith.maximumf %32, %33 : vector<16x128xf32>
    %c1_33 = arith.constant 1 : index
    %c0_34 = arith.constant 0 : index
    %35 = vector.load %arg10[%c1_33, %c0_34] : memref<18x128xf32, #tpu.memory_space<vmem>>, vector<16x128xf32>
    tpu.vector_store %arg10[%c1_33, %c0_34], %34 {strides = array<i32>} : memref<18x128xf32, #tpu.memory_space<vmem>>, vector<16x128xf32>,
    %cst_35 = arith.constant 0.000000e+00 : f32
    %36 = vector.broadcast %cst_35 : f32 to vector<16x128xf32>
    %c0_36 = arith.constant 0 : index
    %c0_37 = arith.constant 0 : index
    %37 = vector.load %arg10[%c0_36, %c0_37] : memref<18x128xf32, #tpu.memory_space<vmem>>, vector<16x128xf32>
    %c0_38 = arith.constant 0 : index
    %c0_39 = arith.constant 0 : index
    %c0_40 = arith.constant 0 : index
    %38 = vector.load %arg5[%c0_38, %c0_39, %c0_40] : memref<3x128x128xbf16, #tpu.memory_space<vmem>>, vector<1x128x128xbf16>
    %39 = vector.shape_cast %38 : vector<1x128x128xbf16> to vector<128x128xbf16>
    %40 = arith.extf %39 : vector<128x128xbf16> to vector<128x128xf32>
    %cst_41 = arith.constant dense<0.000000e+00> : vector<16x128xf32>
    %41 = tpu.matmul %37, %40, %cst_41 {dimension_numbers = #tpu.dot_dimension_numbers<[1], [0], [0], [1], [0, 0, 1, 1], [], []>} : vector<16x128xf32>, vector<128x128xf32>, vector<16x128xf32> -> vector<16x128xf32>
    %42 = arith.addf %36, %41 : vector<16x128xf32>
    %c1_42 = arith.constant 1 : index
    %c0_43 = arith.constant 0 : index
    %43 = vector.load %arg10[%c1_42, %c0_43] : memref<18x128xf32, #tpu.memory_space<vmem>>, vector<16x128xf32>
    %c1_44 = arith.constant 1 : index
    %c0_45 = arith.constant 0 : index
    %c0_46 = arith.constant 0 : index
    %44 = vector.load %arg5[%c1_44, %c0_45, %c0_46] : memref<3x128x128xbf16, #tpu.memory_space<vmem>>, vector<1x128x128xbf16>
    %45 = vector.shape_cast %44 : vector<1x128x128xbf16> to vector<128x128xbf16>
    %46 = arith.extf %45 : vector<128x128xbf16> to vector<128x128xf32>
    %cst_47 = arith.constant dense<0.000000e+00> : vector<16x128xf32>
    %47 = tpu.matmul %43, %46, %cst_47 {dimension_numbers = #tpu.dot_dimension_numbers<[1], [0], [0], [1], [0, 0, 1, 1], [], []>} : vector<16x128xf32>, vector<128x128xf32>, vector<16x128xf32> -> vector<16x128xf32>
    %48 = arith.addf %42, %47 : vector<16x128xf32>
    %c2_48 = arith.constant 2 : index
    %c0_49 = arith.constant 0 : index
    %49 = vector.load %arg10[%c2_48, %c0_49] : memref<18x128xf32, #tpu.memory_space<vmem>>, vector<16x128xf32>
    %c2_50 = arith.constant 2 : index
    %c0_51 = arith.constant 0 : index
    %c0_52 = arith.constant 0 : index
    %50 = vector.load %arg5[%c2_50, %c0_51, %c0_52] : memref<3x128x128xbf16, #tpu.memory_space<vmem>>, vector<1x128x128xbf16>
    %51 = vector.shape_cast %50 : vector<1x128x128xbf16> to vector<128x128xbf16>
    %52 = arith.extf %51 : vector<128x128xbf16> to vector<128x128xf32>
    %cst_53 = arith.constant dense<0.000000e+00> : vector<16x128xf32>
    %53 = tpu.matmul %49, %52, %cst_53 {dimension_numbers = #tpu.dot_dimension_numbers<[1], [0], [0], [1], [0, 0, 1, 1], [], []>} : vector<16x128xf32>, vector<128x128xf32>, vector<16x128xf32> -> vector<16x128xf32>
    %54 = arith.addf %48, %53 : vector<16x128xf32>
    %c0_54 = arith.constant 0 : index
    %c0_55 = arith.constant 0 : index
    %55 = vector.load %arg6[%c0_54, %c0_55] : memref<1x128xf32, #tpu.memory_space<vmem>>, vector<1x128xf32>
    %56 = vector.broadcast %55 : vector<1x128xf32> to vector<16x128xf32>
    %57 = arith.mulf %54, %56 : vector<16x128xf32>
    %c0_56 = arith.constant 0 : index
    %c0_57 = arith.constant 0 : index
    %58 = vector.load %arg7[%c0_56, %c0_57] : memref<1x128xf32, #tpu.memory_space<vmem>>, vector<1x128xf32>
    %59 = vector.broadcast %58 : vector<1x128xf32> to vector<16x128xf32>
    %60 = arith.addf %57, %59 : vector<16x128xf32>
    %c0_58 = arith.constant 0 : index
    %c0_59 = arith.constant 0 : index
    %c0_60 = arith.constant 0 : index
    %61 = vector.load %arg1[%c0_58, %c0_59, %c0_60] : memref<1x16x128xf32, #tpu.memory_space<vmem>>, vector<1x16x128xf32>
    %62 = vector.shape_cast %61 : vector<1x16x128xf32> to vector<16x128xf32>
    %63 = arith.addf %60, %62 : vector<16x128xf32>
    %cst_61 = arith.constant 0.000000e+00 : f32
    %64 = vector.broadcast %cst_61 : f32 to vector<16x128xf32>
    %65 = arith.maximumf %63, %64 : vector<16x128xf32>
    %c0_62 = arith.constant 0 : index
    %c0_63 = arith.constant 0 : index
    %c0_64 = arith.constant 0 : index
    %66 = vector.load %arg8[%c0_62, %c0_63, %c0_64] : memref<1x16x128xf32, #tpu.memory_space<vmem>>, vector<1x16x128xf32>
    %67 = vector.shape_cast %66 : vector<1x16x128xf32> to vector<16x128xf32>
    %68 = vector.shape_cast %65 : vector<16x128xf32> to vector<1x16x128xf32>
    tpu.vector_store %arg8[%c0_62, %c0_63, %c0_64], %68 {strides = array<i32>} : memref<1x16x128xf32, #tpu.memory_space<vmem>>, vector<1x16x128xf32>,
    return
  }
  func.func @transform_0(%arg0: i32) -> (i32, i32, i32) {
    %c0_i32 = arith.constant 0 : i32
    %c0_i32_0 = arith.constant 0 : i32
    %c0_i32_1 = arith.constant 0 : i32
    return %arg0, %c0_i32, %c0_i32_0 : i32, i32, i32
  }
  func.func @transform_1(%arg0: i32) -> (i32, i32, i32) {
    %c0_i32 = arith.constant 0 : i32
    %c0_i32_0 = arith.constant 0 : i32
    %c0_i32_1 = arith.constant 0 : i32
    %c0_i32_2 = arith.constant 0 : i32
    return %c0_i32, %c0_i32_0, %c0_i32_1 : i32, i32, i32
  }
  func.func @transform_2(%arg0: i32) -> (i32, i32) {
    %c0_i32 = arith.constant 0 : i32
    %c0_i32_0 = arith.constant 0 : i32
    %c0_i32_1 = arith.constant 0 : i32
    return %c0_i32, %c0_i32_0 : i32, i32
  }
  func.func @transform_3(%arg0: i32) -> (i32, i32) {
    %c0_i32 = arith.constant 0 : i32
    %c0_i32_0 = arith.constant 0 : i32
    %c0_i32_1 = arith.constant 0 : i32
    return %c0_i32, %c0_i32_0 : i32, i32
  }
  func.func @transform_4(%arg0: i32) -> (i32, i32, i32) {
    %c0_i32 = arith.constant 0 : i32
    %c0_i32_0 = arith.constant 0 : i32
    %c0_i32_1 = arith.constant 0 : i32
    %c0_i32_2 = arith.constant 0 : i32
    return %c0_i32, %c0_i32_0, %c0_i32_1 : i32, i32, i32
  }
  func.func @transform_5(%arg0: i32) -> (i32, i32) {
    %c0_i32 = arith.constant 0 : i32
    %c0_i32_0 = arith.constant 0 : i32
    %c0_i32_1 = arith.constant 0 : i32
    return %c0_i32, %c0_i32_0 : i32, i32
  }
  func.func @transform_6(%arg0: i32) -> (i32, i32) {
    %c0_i32 = arith.constant 0 : i32
    %c0_i32_0 = arith.constant 0 : i32
    %c0_i32_1 = arith.constant 0 : i32
    return %c0_i32, %c0_i32_0 : i32, i32
  }
  func.func @transform_7(%arg0: i32) -> (i32, i32, i32) {
    %c0_i32 = arith.constant 0 : i32
    %c0_i32_0 = arith.constant 0 : i32
    %c0_i32_1 = arith.constant 0 : i32
    return %arg0, %c0_i32, %c0_i32_0 : i32, i32, i32
  }
}

</mosaic_0001>

<bundles_post_ra>
// kernel: tpu_custom_call.1
= control target key start
LH: loop header
LB: loop body
LE: loop exit
PB: predicated region body
PF: predicated region fallthrough
CT: control target
= control target key end

     0   :  { %12 = vsyncpa [#allocation5], 0  ;;  %s2469_s0 = inlined_call_operand.hbm [shape: f32[2,16,128], index: 0, kind: input, shape index: {}]   ;;  %s2470_s1 = inlined_call_operand.hbm [shape: bf16[3,128,128], index: 1, kind: input, shape index: {}]   ;;  %s2471_s2 = inlined_call_operand.vmem [shape: f32[1,128], index: 2, kind: input, shape index: {}]   ;;  %s2472_s3 = inlined_call_operand.vmem [shape: f32[1,128], index: 3, kind: input, shape index: {}]   ;;  %s2473_s4 = inlined_call_operand.hbm [shape: bf16[3,128,128], index: 4, kind: input, shape index: {}]   ;;  %s2474_s5 = inlined_call_operand.vmem [shape: f32[1,128], index: 5, kind: input, shape index: {}]   ;;  %s2475_s6 = inlined_call_operand.vmem [shape: f32[1,128], index: 6, kind: input, shape index: {}]   ;;  %s2476_s7 = inlined_call_operand.hbm [shape: f32[2,16,128], index: 7, kind: output, shape index: {}]  }
   0x1   :  { %14 = vsyncpa [#allocation5 + $0x1], 0 }
   0x2   :  { %15 = vsyncpa [#allocation8], 0 }
   0x3   :  { %16 = vsyncpa [#allocation6], 0 }
   0x4   :  { %18 = vsyncpa [#allocation6 + $0x1], 0  ;;  %s2209_s24 = smov 0   ;;  %s2211_s25 = smov 0  }
   0x5   :  { %s2213_s26 = smov 0   ;;  %s2215_s27 = smov 0  }
   0x6 LB: > { %s2230_s28 = sadd.s32 4294967295, %s2156_s27   ;;  %s1150_s29 = sadd.s32 4294967294, %s2156_s27   ;;  %s2156_s27 = sphi %s2215_s27, %s2496_s27   ;;  %s2152_s26 = sphi %s2213_s26, %s2495_s26   ;;  %s2148_s25 = sphi %s2211_s25, %s2494_s25   ;;  %s2144_s24 = sphi %s2209_s24, %s2493_s24  }
   0x7   : > { %p44_p0 = scmp.ne.s32.totalorder %s2148_s25, %s2144_s24  ;;  %p2477_p1 = scmp.eq.s32.totalorder %s2230_s28, 0 }
   0x8   : > { %p200_p3 = scmp.eq.s32.totalorder %s1150_s29, 1  ;;  %p1151_p5 = scmp.ge.s32.totalorder %s2156_s27, 1 }
   0x9   : > { %p2239_p4 = por %p2477_p1, %p44_p0  ;;  %p207_p7 = scmp.lt.s32.totalorder %s2156_s27, 3 }
   0xa   : > { %p2244_p6 = por %p200_p3, %p44_p0  ;;  %s2158_s10 = smov [#allocation7]  }
   0xb   : > { %s2480_s30 = scalar_select %p2239_p4, 1, 0 }
   0xc   : > { %s2481_s8 = scalar_select %p2244_p6, 1, 0 }
   0xd   : > { %p2249_p8 = pnand %p1151_p5, %p207_p7  ;;  %s219_s11 = sshll.u32 %s2158_s10, 4  ;;  %s2253_s11 = int_to_ptr.vmem [resolvable:$true] %s219_s11 }
   0xe   : > { %s2159_s13 = smov [#allocation9]   ;;  %s2000_s17 = scalar_lea.hbm %s2470_s1, 3072 }
   0xf   : > { %p1938_p9 = pneg %p2249_p8  ;;  %s238_s14 = sshll.u32 %s2159_s13, 4  ;;  %s2264_s14 = int_to_ptr.vmem [resolvable:$true] %s238_s14 }
  0x10   : > { %p2001_p12 = scmp.ne.s32.totalorder %s2470_s1, %s2000_s17  ;;  %p2007_p5 = scmp.lt.u32.totalorder %s2000_s17, %s2470_s1 }
  0x11   : > { %p2260_p11 = pnand %p1938_p9, %p2477_p1 }
  0x13   : > { %p2002_p13 = pneg %p2260_p11 }
  0x15   : > { %p2003_p0 = pnand %p2002_p13, %p2001_p12 }
  0x17   : > { %p2004_p3 = pneg %p2003_p0 }
  0x19   : > { %p2009_p7 = pnand %p2007_p5, %p2004_p3 }
  0x1b   : > { %2012 = shalt.err (!%p2009_p7)
}
  0x1c   : > { %s2013_s22 = scalar_lea.vmem %s2253_s11, 3072  ;;  %p2021_p2 = scmp.lt.s32.totalorder %s2253_s11, %s2253_s11 }
  0x1d   : > { %p2014_p9 = scmp.ne.s32.totalorder %s2253_s11, %s2013_s22  ;;  %p2022_p12 = scmp.lt.s32.totalorder %s2013_s22, %s2013_s22 }
  0x1f   : > { %p2016_p10 = pnand %p2014_p9, %p2002_p13  ;;  %p2023_p0 = por %p2022_p12, %p2021_p2 }
  0x21   : > { %p2017_p1 = pneg %p2016_p10 }
  0x23   : > { %p2024_p6 = pnand %p2023_p0, %p2017_p1 }
  0x25   : > { %2027 = shalt.err (!%p2024_p6)
}
  0x26   : > { %s2160_s23 = smov 64   ;;  %s2161_s29 = smov 4  }
  0x27   : > { %1941 = dma.hbm_to_vmem [thread:$0]  (!%p2260_p11), %s2470_s1, 3072, %s2253_s11, [#allocation8], %s2160_s23, %s2160_s23, %s2161_s29  }
  0x28   : > { %s2028_s17 = scalar_lea.hbm %s2473_s4, 3072 }
  0x29   : > { %p2029_p2 = scmp.ne.s32.totalorder %s2473_s4, %s2028_s17  ;;  %p2035_p10 = scmp.lt.u32.totalorder %s2028_s17, %s2473_s4 }
  0x2b   : > { %p2031_p1 = pnand %p2029_p2, %p2002_p13 }
  0x2d   : > { %p2032_p6 = pneg %p2031_p1 }
  0x2f   : > { %p2037_p3 = pnand %p2035_p10, %p2032_p6 }
  0x31   : > { %2040 = shalt.err (!%p2037_p3)
}
  0x32   : > { %s2041_s11 = scalar_lea.vmem %s2264_s14, 3072  ;;  %p2049_p12 = scmp.lt.s32.totalorder %s2264_s14, %s2264_s14 }
  0x33   : > { %p2042_p5 = scmp.ne.s32.totalorder %s2264_s14, %s2041_s11  ;;  %p2050_p0 = scmp.lt.s32.totalorder %s2041_s11, %s2041_s11 }
  0x35   : > { %p2044_p7 = pnand %p2042_p5, %p2002_p13  ;;  %p2051_p2 = por %p2050_p0, %p2049_p12 }
  0x37   : > { %p2045_p9 = pneg %p2044_p7 }
  0x39   : > { %p2052_p1 = pnand %p2051_p2, %p2045_p9 }
  0x3b   : > { %2055 = shalt.err (!%p2052_p1)
}
  0x3c   : > { %1944 = dma.hbm_to_vmem [thread:$0]  (!%p2260_p11), %s2473_s4, 3072, %s2264_s14, [#allocation8], %s2160_s23, %s2160_s23, %s2161_s29  }
  0x3d   : > { %s2319_s13 = sadd.s32 1, %s2156_s27   ;;  %s31_s12 = sadd.s32 1, %s2152_s26 }
  0x3e   : > { %s28_s15 = ssub.s32 %s2156_s27, %s2319_s13  ;;  %p38_p13 = scmp.ne.s32.totalorder %s2152_s26, %s2148_s25 }
  0x3f   : > { %p29_p6 = scmp.eq.s32.totalorder %s28_s15, 0  ;;  %p39_p10 = scmp.eq.s32.totalorder %s2156_s27, 0 }
  0x40   : > { %p2484_p3 = scmp.eq.s32.totalorder %s2230_s28, 1  ;;  %p1955_p7 = scmp.lt.s32.totalorder %s2156_s27, 2 }
  0x41   : > { %s2335_s17 = scalar_select %p29_p6, %s2152_s26, %s31_s12  }
  0x42   : > { %p2329_p5 = por %p2484_p3, %p38_p13  ;;  %p40_p9 = por %p39_p10, %p38_p13 }
  0x43   : > { %s258_s18 = sand.u32 1, %s2152_s26   ;;  %s1172_s14 = sshll.u32 %s2156_s27, 8 }
  0x44   : > { %s2485_s16 = scalar_select %p2329_p5, 1, 0 }
  0x45   : > { %s1155_s19 = sshll.u32 %s258_s18, 4  ;;  %s2342_s20 = scalar_lea.hbm %s2469_s0, %s1172_s14 }
  0x46   : > { %s262_s21 = scalar_lea.vmem [#allocation4], %s1155_s19  ;;  %p2346_p11 = pnand %p1955_p7, %p40_p9 }
  0x47   : > { %s269_s11 = sshll.u32 %s262_s21, 4  ;;  %s2350_s10 = scalar_lea.sflag [#allocation5], %s258_s18  ;;  %s2344_s11 = int_to_ptr.vmem [resolvable:$true] %s269_s11 }
  0x48   : > { %s2056_s12 = scalar_lea.hbm %s2342_s20, 256  ;;  %p2058_p0 = pneg %p2346_p11 }
  0x49   : > { %p2057_p12 = scmp.ne.s32.totalorder %s2342_s20, %s2056_s12  ;;  %s2061_s14 = scalar_lea.hbm %s2469_s0, 512 }
  0x4a   : > { %p2062_p13 = scmp.lt.u32.totalorder %s2342_s20, %s2469_s0  ;;  %p2063_p6 = scmp.lt.u32.totalorder %s2061_s14, %s2056_s12 }
  0x4b   : > { %p2059_p2 = pnand %p2058_p0, %p2057_p12  ;;  %p2065_p3 = scmp.lt.u32.totalorder %s2056_s12, %s2342_s20 }
  0x4c   : > { %p2064_p10 = por %p2063_p6, %p2062_p13 }
  0x4d   : > { %p2060_p1 = pneg %p2059_p2 }
  0x4e   : > { %p2066_p7 = por %p2065_p3, %p2064_p10 }
  0x50   : > { %p2067_p9 = pnand %p2066_p7, %p2060_p1 }
  0x52   : > { %2070 = shalt.err (!%p2067_p9)
}
  0x53   : > { %s2071_s18 = scalar_lea.vmem %s2344_s11, 256  ;;  %s2162_s21 = smov [#allocation4]  }
  0x54   : > { %p2072_p12 = scmp.ne.s32.totalorder %s2344_s11, %s2071_s18  ;;  %s2076_s15 = sshll.u32 %s2162_s21, 4  ;;  %s2077_s15 = int_to_ptr.vmem [resolvable:$false] %s2076_s15 }
  0x55   : > { %s2078_s19 = scalar_lea.vmem %s2077_s15, 512  ;;  %p2079_p4 = scmp.lt.s32.totalorder %s2344_s11, %s2077_s15 }
  0x56   : > { %p2074_p2 = pnand %p2072_p12, %p2058_p0  ;;  %p2080_p13 = scmp.lt.s32.totalorder %s2078_s19, %s2071_s18 }
  0x58   : > { %p2075_p5 = pneg %p2074_p2  ;;  %p2081_p6 = por %p2080_p13, %p2079_p4 }
  0x5a   : > { %p2082_p10 = pnand %p2081_p6, %p2075_p5 }
  0x5c   : > { %2085 = shalt.err (!%p2082_p10)
}
  0x5d   : > { %s2163_s12 = smov 128   ;;  %s2164_s14 = smov 8  }
  0x5e   : > { %1948 = dma.hbm_to_vmem [thread:$0]  (!%p2346_p11), %s2342_s20, 256, %s2344_s11, %s2350_s10, %s2163_s12, %s2163_s12, %s2164_s14  }
  0x5f   : > { %281 = sbr.rel (%p2249_p8) target bundleno = 723 (0x2d3), region = 48  ;;  %s2381_s23 = sand.u32 (!%p2249_p8), 1, %s2148_s25  }
  0x60   : > { %s1159_s29 = sshll.u32 (!%p2249_p8), %s2381_s23, 4  ;;  %s284_s18 = scalar_lea.sflag (!%p2249_p8), [#allocation5], %s2381_s23 }
  0x61   : > { %s287_s21 = scalar_lea.vmem (!%p2249_p8), [#allocation4], %s1159_s29  ;;  %p2487_p4 = scmp.ne.s32.totalorder (!%p2249_p8), %s2480_s30, 0 }
  0x66   : > { %2131 = dma.done.wait (%p2487_p4), %s284_s18, 256  }
  0x67   : > { %2133 = vsyncadd (%p2487_p4), %s284_s18, 4294967040  ;;  %p2488_p5 = scmp.eq.s32.totalorder %s2230_s28, 0 }
  0x69   : > { %2135 = dma.done.wait (%p2488_p5), [#allocation8], 6144   ;;  %p2489_p8 = pmov %p2488_p5 }
  0x6a   : > { %v2165_v0 = vmov 0.0   ;;  %v1207_v1 = vld [vmem:[#allocation7 + $0x40] sm:$0xff]   ;;  %v1373_v2 = vld [vmem:[#allocation7 + $0x48] sm:$0xff]   ;;  %v1374_v5 = vld [vmem:[#allocation7 + $0x50] sm:$0xff]   ;;  %s325_s12 = scalar_lea.vmem [#allocation10], %s1159_s29  ;;  %s1173_s18 = sshll.u32 %s2230_s28, 8 }
  0x6b   : > { %2137 = vsyncadd (%p2489_p8), [#allocation8], 4294961152  ;;  %326 = vst [vmem:[#allocation2] sm:$0x1] %v2165_v0  ;;  %1727 = vmatprep.subr.bf16.mxu0 %v1207_v1  ;;  %v2395_v3 = vld [vmem:[%s287_s21] sm:$0xff]  ;;  %v2399_v4 = vld [vmem:[%s287_s21 + $0x8] sm:$0xff]  ;;  %s2425_s9 = scalar_lea.hbm %s2476_s7, %s1173_s18 }
  0x6c   : > { %327 = vst [vmem:[#allocation2 + $0x11] sm:$0x1] %v2165_v0  ;;  %328 = vst [vmem:[#allocation3] sm:$0x1] %v2165_v0  ;;  %1729 = vmatpush3.bf16.msra.mxu0 %v1207_v1  ;;  %1548 = vmatprep.mubr.f32.mxu0 %v2395_v3  ;;  %v1375_v6 = vld [vmem:[#allocation7 + $0x58] sm:$0xff]   ;;  %v1303_v7 = vld [vmem:[#allocation9 + $0x40] sm:$0xff]  }
  0x6d   : > { %329 = vst [vmem:[#allocation3 + $0x11] sm:$0x1] %v2165_v0  ;;  %1731 = vmatprep.subr.bf16.mxu0 %v1373_v2  ;;  %332 = vst [vmem:[#allocation2 + $0x1] sm:$0xff] %v2395_v3  ;;  %1823 = vmatprep.subr.bf16.mxu1 %v1303_v7  ;;  %v1394_v8 = vld [vmem:[#allocation9 + $0x48] sm:$0xff]   ;;  %v1376_v9 = vld [vmem:[#allocation7 + $0x60] sm:$0xff]   ;;  %s1058_s14 = sshll.u32 %s325_s12, 4  ;;  %s2419_s14 = int_to_ptr.vmem [resolvable:$true] %s1058_s14 }
  0x6e   : > { %333 = vst [vmem:[#allocation2 + $0x9] sm:$0xff] %v2399_v4  ;;  %1825 = vmatpush3.bf16.msra.mxu1 %v1303_v7  ;;  %v1395_v10 = vld [vmem:[#allocation9 + $0x50] sm:$0xff]   ;;  %v1377_v11 = vld [vmem:[#allocation7 + $0x68] sm:$0xff]   ;;  %v1396_v12 = vld [vmem:[#allocation9 + $0x58] sm:$0xff]   ;;  %s1045_s29 = scalar_lea.sflag [#allocation6], %s2381_s23  ;;  %s2086_s28 = scalar_lea.vmem %s2419_s14, 256 }
  0x6f   : > { %1827 = vmatprep.subr.bf16.mxu1 %v1394_v8  ;;  %v1378_v13 = vld [vmem:[#allocation7 + $0x70] sm:$0xff]   ;;  %v1379_v14 = vld [vmem:[#allocation7 + $0x78] sm:$0xff]   ;;  %v1175_v15 = vld [vmem:[#allocation7] sm:$0xff]   ;;  %p2087_p11 = scmp.ne.s32.totalorder %s2419_s14, %s2086_s28  ;;  %p2490_p0 = scmp.ne.s32.totalorder %s2485_s16, 0 }
  0x70   : > { %1733 = vmatpush3.bf16.msra.mxu0 %v1373_v2  ;;  %v1366_v17 = vld [vmem:[#allocation7 + $0x8] sm:$0xff]   ;;  %v1367_v18 = vld [vmem:[#allocation7 + $0x10] sm:$0xff]   ;;  %v1368_v19 = vld [vmem:[#allocation7 + $0x18] sm:$0xff]   ;;  %s2166_s20 = smov [#allocation10]  }
  0x71   : > { %1735 = vmatprep.subr.bf16.mxu0 %v1374_v5  ;;  %v1369_v20 = vld [vmem:[#allocation7 + $0x20] sm:$0xff]   ;;  %v1370_v21 = vld [vmem:[#allocation7 + $0x28] sm:$0xff]   ;;  %v1371_v22 = vld [vmem:[#allocation7 + $0x30] sm:$0xff]   ;;  %p2088_p1 = pnand %p2087_p11, %p2490_p0  ;;  %s2090_s11 = sshll.u32 %s2166_s20, 4  ;;  %s2091_s11 = int_to_ptr.vmem [resolvable:$false] %s2090_s11 }
  0x72   : > { %1829 = vmatpush3.bf16.msra.mxu1 %v1394_v8  ;;  %v1372_v23 = vld [vmem:[#allocation7 + $0x38] sm:$0xff]   ;;  %v1239_v24 = vld [vmem:[#allocation7 + $0x80] sm:$0xff]   ;;  %v1380_v27 = vld [vmem:[#allocation7 + $0x88] sm:$0xff]   ;;  %s2092_s22 = scalar_lea.vmem %s2091_s11, 512  ;;  %p2093_p7 = scmp.lt.s32.totalorder %s2419_s14, %s2091_s11 }
  0x73   : > { %1831 = vmatprep.subr.bf16.mxu1 %v1395_v10  ;;  %v1381_v28 = vld [vmem:[#allocation7 + $0x90] sm:$0xff]   ;;  %v1382_v29 = vld [vmem:[#allocation7 + $0x98] sm:$0xff]   ;;  %v1383_v30 = vld [vmem:[#allocation7 + $0xa0] sm:$0xff]   ;;  %p2089_p3 = pneg %p2088_p1  ;;  %p2094_p9 = scmp.lt.s32.totalorder %s2092_s22, %s2086_s28 }
  0x74   : > { %1737 = vmatpush3.bf16.msra.mxu0 %v1374_v5  ;;  %v334_v16 = vld [vmem:[#allocation2] sm:$0xff]  ;;  %v1384_v31 = vld [vmem:[#allocation7 + $0xa8] sm:$0xff]   ;;  %v1386_v33 = vld [vmem:[#allocation7 + $0xb8] sm:$0xff]  }
  0x75   : > { %1739 = vmatprep.subr.bf16.mxu0 %v1375_v6  ;;  %v335_v25 = vld [vmem:[#allocation2 + $0x8] sm:$0xff]  ;;  %v1385_v32 = vld [vmem:[#allocation7 + $0xb0] sm:$0xff]   ;;  %v1397_v35 = vld [vmem:[#allocation9 + $0x60] sm:$0xff]   ;;  %p2095_p12 = por %p2094_p9, %p2093_p7 }
  0x76   : > { %1833 = vmatpush3.bf16.msra.mxu1 %v1395_v10  ;;  %v553_v26 = vld [vmem:[#allocation2 + $0x2] sm:$0xff]  ;;  %v554_v34 = vld [vmem:[#allocation2 + $0xa] sm:$0xff]  ;;  %v1398_v36 = vld [vmem:[#allocation9 + $0x68] sm:$0xff]  }
  0x77   : > { %1835 = vmatprep.subr.bf16.mxu1 %v1396_v12  ;;  %v1399_v37 = vld [vmem:[#allocation9 + $0x70] sm:$0xff]   ;;  %v1400_v38 = vld [vmem:[#allocation9 + $0x78] sm:$0xff]   ;;  %v1271_v39 = vld [vmem:[#allocation9] sm:$0xff]   ;;  %p2096_p2 = pnand %p2095_p12, %p2089_p3 }
  0x78   : > { %1741 = vmatpush3.bf16.msra.mxu0 %v1375_v6  ;;  %v1163_v40 = vld [vmem:[%s2471_s2] ss:$0 sm:$0xff]  ;;  %v1387_v50 = vld [vmem:[#allocation9 + $0x8] sm:$0xff]   ;;  %v1389_v53 = vld [vmem:[#allocation9 + $0x18] sm:$0xff]  }
  0x79   : > { %1743 = vmatprep.subr.bf16.mxu0 %v1376_v9  ;;  %v1164_v42 = vld [vmem:[%s2472_s3] ss:$0 sm:$0xff]  ;;  %v1390_v54 = vld [vmem:[#allocation9 + $0x20] sm:$0xff]   ;;  %v1391_v55 = vld [vmem:[#allocation9 + $0x28] sm:$0xff]  }
  0x7a   : > { %1837 = vmatpush3.bf16.msra.mxu1 %v1396_v12  ;;  %v1388_v51 = vld [vmem:[#allocation9 + $0x10] sm:$0xff]   ;;  %v1393_v57 = vld [vmem:[#allocation9 + $0x38] sm:$0xff]   ;;  %v1335_v58 = vld [vmem:[#allocation9 + $0x80] sm:$0xff]  }
  0x7b   : > { %1839 = vmatprep.subr.bf16.mxu1 %v1397_v35  ;;  %v1392_v56 = vld [vmem:[#allocation9 + $0x30] sm:$0xff]   ;;  %v1401_v60 = vld [vmem:[#allocation9 + $0x88] sm:$0xff]   ;;  %v1403_v63 = vld [vmem:[#allocation9 + $0x98] sm:$0xff]  }
  0x7c   : > { %1745 = vmatpush3.bf16.msra.mxu0 %v1376_v9  ;;  %v1402_v62 = vld [vmem:[#allocation9 + $0x90] sm:$0xff]   ;;  %v1404_v0 = vld [vmem:[#allocation9 + $0xa0] sm:$0xff]   ;;  %v1405_v1 = vld [vmem:[#allocation9 + $0xa8] sm:$0xff]  }
  0x7d   : > { %1747 = vmatprep.subr.bf16.mxu0 %v1377_v11  ;;  %v1406_v2 = vld [vmem:[#allocation9 + $0xb0] sm:$0xff]   ;;  %v1407_v5 = vld [vmem:[#allocation9 + $0xb8] sm:$0xff]  }
  0x7e   : > { %1841 = vmatpush3.bf16.msra.mxu1 %v1397_v35  ;;  %v1165_v7 = vld [vmem:[%s2474_s5] ss:$0 sm:$0xff] }
  0x7f   : > { %1843 = vmatprep.subr.bf16.mxu1 %v1398_v36  ;;  %v1166_v9 = vld [vmem:[%s2475_s6] ss:$0 sm:$0xff] }
  0x80   : > { %1749 = vmatpush3.bf16.msra.mxu0 %v1377_v11 }
  0x81   : > { %1751 = vmatprep.subr.bf16.mxu0 %v1378_v13 }
  0x82   : > { %1845 = vmatpush3.bf16.msra.mxu1 %v1398_v36 }
  0x83   : > { %1847 = vmatprep.subr.bf16.mxu1 %v1399_v37 }
  0x84   : > { %1753 = vmatpush3.bf16.msra.mxu0 %v1378_v13 }
  0x85   : > { %1755 = vmatprep.subr.bf16.mxu0 %v1379_v14 }
  0x86   : > { %1849 = vmatpush3.bf16.msra.mxu1 %v1399_v37 }
  0x87   : > { %1851 = vmatprep.subr.bf16.mxu1 %v1400_v38 }
  0x88   : > { %1757 = vmatpush3.bf16.msra.mxu0 %v1379_v14 }
  0x89   : > { %1759 = vmatprep.subr.bf16.mxu0 %v1175_v15 }
  0x8a   : > { %1853 = vmatpush3.bf16.msra.mxu1 %v1400_v38 }
  0x8b   : > { %1549 = vmatmul.mubr.f32.vlgmr.msra.gmra.mrb[0].mxu0 %v2399_v4  ;;  %1855 = vmatprep.subr.bf16.mxu1 %v1271_v39 }
  0x8c   : > { %1761 = vmatpush3.bf16.msra.mxu0 %v1175_v15  ;;  %1583 = vmatprep.mubr.f32.mxu0 %v334_v16 }
  0x8d   : > { %1763 = vmatprep.subr.bf16.mxu0 %v1366_v17 }
  0x90   : > { %1765 = vmatpush3.bf16.msra.mxu0 %v1366_v17 }
  0x91   : > { %1767 = vmatprep.subr.bf16.mxu0 %v1367_v18 }
  0x94   : > { %1769 = vmatpush3.bf16.msra.mxu0 %v1367_v18 }
  0x95   : > { %1771 = vmatprep.subr.bf16.mxu0 %v1368_v19 }
  0x98   : > { %1773 = vmatpush3.bf16.msra.mxu0 %v1368_v19 }
  0x99   : > { %1775 = vmatprep.subr.bf16.mxu0 %v1369_v20 }
  0x9c   : > { %1777 = vmatpush3.bf16.msra.mxu0 %v1369_v20 }
  0x9d   : > { %1779 = vmatprep.subr.bf16.mxu0 %v1370_v21 }
  0xa0   : > { %1781 = vmatpush3.bf16.msra.mxu0 %v1370_v21 }
  0xa1   : > { %1783 = vmatprep.subr.bf16.mxu0 %v1371_v22 }
  0xa4   : > { %1785 = vmatpush3.bf16.msra.mxu0 %v1371_v22 }
  0xa5   : > { %1787 = vmatprep.subr.bf16.mxu0 %v1372_v23 }
  0xa8   : > { %1789 = vmatpush3.bf16.msra.mxu0 %v1372_v23 }
  0xa9   : > { %1791 = vmatprep.subr.bf16.mxu0 %v1239_v24 }
  0xab   : > { %1584 = vmatmul.mubr.f32.vlgmr.msra.gmra.mrb[0].mxu0 %v335_v25 }
  0xac   : > { %1793 = vmatpush3.bf16.msra.mxu0 %v1239_v24  ;;  %1618 = vmatprep.mubr.f32.mxu0 %v553_v26 }
  0xad   : > { %1795 = vmatprep.subr.bf16.mxu0 %v1380_v27 }
  0xb0   : > { %1797 = vmatpush3.bf16.msra.mxu0 %v1380_v27 }
  0xb1   : > { %1799 = vmatprep.subr.bf16.mxu0 %v1381_v28 }
  0xb4   : > { %1801 = vmatpush3.bf16.msra.mxu0 %v1381_v28 }
  0xb5   : > { %1803 = vmatprep.subr.bf16.mxu0 %v1382_v29 }
  0xb8   : > { %1805 = vmatpush3.bf16.msra.mxu0 %v1382_v29 }
  0xb9   : > { %1807 = vmatprep.subr.bf16.mxu0 %v1383_v30 }
  0xbc   : > { %1809 = vmatpush3.bf16.msra.mxu0 %v1383_v30 }
  0xbd   : > { %1811 = vmatprep.subr.bf16.mxu0 %v1384_v31 }
  0xc0   : > { %1813 = vmatpush3.bf16.msra.mxu0 %v1384_v31 }
  0xc1   : > { %1815 = vmatprep.subr.bf16.mxu0 %v1385_v32 }
  0xc4   : > { %1817 = vmatpush3.bf16.msra.mxu0 %v1385_v32 }
  0xc5   : > { %1819 = vmatprep.subr.bf16.mxu0 %v1386_v33 }
  0xc8   : > { %1821 = vmatpush3.bf16.msra.mxu0 %v1386_v33 }
  0xcb   : > { %1619 = vmatmul.mubr.f32.vlgmr.msra.gmra.mrb[0].mxu0 %v554_v34 }
 0x19e   : > { %v1620_v41 = vpop.f32.mrb[0].mxu0 }
 0x19f   : > { %v673_v43 = vmul.f32 %v1620_v41, %v1163_v40  ;;  %v654_v44 = vpop.f32.mrb[1].mxu0 }
 0x1a0   : > { %v672_v45 = vmul.f32 %v1163_v40, %v654_v44 }
 0x1a1   : > { %v682_v46 = vadd.f32 %v1164_v42, %v673_v43 }
 0x1a2   : > { %v681_v47 = vadd.f32 %v1164_v42, %v672_v45 }
 0x1a3   : > { %v684_v48 = vmax.f32 %v682_v46, 0.0 }
 0x1a4   : > { %v683_v49 = vmax.f32 %v681_v47, 0.0 }
 0x1a5   : > { %686 = vst [vmem:[#allocation3 + $0x9] sm:$0xff] %v684_v48 }
 0x1a6   : > { %685 = vst [vmem:[#allocation3 + $0x1] sm:$0xff] %v683_v49  ;;  %1653 = vmatprep.mubr.f32.mxu1 %v683_v49 }
 0x1a7   : > { %1654 = vmatmul.mubr.f32.vlgmr.msra.gmra.mrb[0].mxu1 %v684_v48 }
 0x1a8   : > { %1857 = vmatpush3.bf16.msra.mxu1 %v1271_v39 }
 0x1a9   : > { %1859 = vmatprep.subr.bf16.mxu1 %v1387_v50 }
 0x1ac   : > { %1861 = vmatpush3.bf16.msra.mxu1 %v1387_v50  ;;  %v907_v6 = vld [vmem:[#allocation3 + $0xa] sm:$0xff] }
 0x1ad   : > { %v687_v52 = vld [vmem:[#allocation3] sm:$0xff]  ;;  %1863 = vmatprep.subr.bf16.mxu1 %v1388_v51  ;;  %v688_v59 = vld [vmem:[#allocation3 + $0x8] sm:$0xff] }
 0x1ae   : > { %1688 = vmatprep.mubr.f32.mxu1 %v687_v52  ;;  %v906_v61 = vld [vmem:[#allocation3 + $0x2] sm:$0xff] }
 0x1b0   : > { %1865 = vmatpush3.bf16.msra.mxu1 %v1388_v51 }
 0x1b1   : > { %1867 = vmatprep.subr.bf16.mxu1 %v1389_v53 }
 0x1b4   : > { %1869 = vmatpush3.bf16.msra.mxu1 %v1389_v53 }
 0x1b5   : > { %1871 = vmatprep.subr.bf16.mxu1 %v1390_v54 }
 0x1b8   : > { %1873 = vmatpush3.bf16.msra.mxu1 %v1390_v54 }
 0x1b9   : > { %1875 = vmatprep.subr.bf16.mxu1 %v1391_v55 }
 0x1bc   : > { %1877 = vmatpush3.bf16.msra.mxu1 %v1391_v55 }
 0x1bd   : > { %1879 = vmatprep.subr.bf16.mxu1 %v1392_v56 }
 0x1c0   : > { %1881 = vmatpush3.bf16.msra.mxu1 %v1392_v56 }
 0x1c1   : > { %1883 = vmatprep.subr.bf16.mxu1 %v1393_v57 }
 0x1c4   : > { %1885 = vmatpush3.bf16.msra.mxu1 %v1393_v57 }
 0x1c5   : > { %1887 = vmatprep.subr.bf16.mxu1 %v1335_v58 }
 0x1c7   : > { %1689 = vmatmul.mubr.f32.vlgmr.msra.gmra.mrb[0].mxu1 %v688_v59 }
 0x1c8   : > { %1889 = vmatpush3.bf16.msra.mxu1 %v1335_v58  ;;  %1723 = vmatprep.mubr.f32.mxu1 %v906_v61 }
 0x1c9   : > { %1891 = vmatprep.subr.bf16.mxu1 %v1401_v60 }
 0x1cc   : > { %1893 = vmatpush3.bf16.msra.mxu1 %v1401_v60 }
 0x1cd   : > { %1895 = vmatprep.subr.bf16.mxu1 %v1402_v62 }
 0x1d0   : > { %1897 = vmatpush3.bf16.msra.mxu1 %v1402_v62 }
 0x1d1   : > { %1899 = vmatprep.subr.bf16.mxu1 %v1403_v63 }
 0x1d4   : > { %1901 = vmatpush3.bf16.msra.mxu1 %v1403_v63 }
 0x1d5   : > { %1903 = vmatprep.subr.bf16.mxu1 %v1404_v0 }
 0x1d8   : > { %1905 = vmatpush3.bf16.msra.mxu1 %v1404_v0 }
 0x1d9   : > { %1907 = vmatprep.subr.bf16.mxu1 %v1405_v1 }
 0x1dc   : > { %1909 = vmatpush3.bf16.msra.mxu1 %v1405_v1 }
 0x1dd   : > { %1911 = vmatprep.subr.bf16.mxu1 %v1406_v2 }
 0x1e0   : > { %1913 = vmatpush3.bf16.msra.mxu1 %v1406_v2 }
 0x1e1   : > { %1915 = vmatprep.subr.bf16.mxu1 %v1407_v5 }
 0x1e4   : > { %1917 = vmatpush3.bf16.msra.mxu1 %v1407_v5 }
 0x1e7   : > { %1724 = vmatmul.mubr.f32.vlgmr.msra.gmra.mrb[0].mxu1 %v907_v6 }
 0x2ba   : > { %v1725_v8 = vpop.f32.mrb[0].mxu1 }
 0x2bb   : > { %v1026_v10 = vmul.f32 %v1725_v8, %v1165_v7  ;;  %v1007_v11 = vpop.f32.mrb[1].mxu1 }
 0x2bc   : > { %v1025_v12 = vmul.f32 %v1165_v7, %v1007_v11 }
 0x2bd   : > { %v1035_v13 = vadd.f32 %v1166_v9, %v1026_v10 }
 0x2be   : > { %v1034_v14 = vadd.f32 %v1166_v9, %v1025_v12 }
 0x2bf   : > { %v1039_v15 = vadd.f32 %v1035_v13, %v2399_v4 }
 0x2c0   : > { %v1038_v16 = vadd.f32 %v1034_v14, %v2395_v3 }
 0x2c1   : > { %v1041_v17 = vmax.f32 %v1039_v15, 0.0 }
 0x2c2   : > { %v1040_v18 = vmax.f32 %v1038_v16, 0.0 }
 0x2c3   : > { %1043 = vst [vmem:[%s325_s12 + $0x8] sm:$0xff] %v1041_v17 }
 0x2c4   : > { %1042 = vst [vmem:[%s325_s12] sm:$0xff] %v1040_v18 }
 0x2c5   : > { %2099 = shalt.err (!%p2096_p2)
}
 0x2c6   : > { %s2100_s10 = scalar_lea.hbm %s2425_s9, 256  ;;  %s2104_s12 = scalar_lea.hbm %s2476_s7, 512 }
 0x2c7   : > { %p2101_p13 = scmp.ne.s32.totalorder %s2425_s9, %s2100_s10  ;;  %p2105_p4 = scmp.lt.u32.totalorder %s2425_s9, %s2476_s7 }
 0x2c8   : > { %p2106_p5 = scmp.lt.u32.totalorder %s2104_s12, %s2100_s10  ;;  %p2108_p11 = scmp.lt.u32.totalorder %s2100_s10, %s2425_s9 }
 0x2c9   : > { %p2102_p6 = pnand %p2101_p13, %p2490_p0 }
 0x2ca   : > { %p2107_p8 = por %p2106_p5, %p2105_p4 }
 0x2cb   : > { %p2103_p10 = pneg %p2102_p6 }
 0x2cc   : > { %p2109_p1 = por %p2108_p11, %p2107_p8 }
 0x2ce   : > { %p2110_p3 = pnand %p2109_p1, %p2103_p10 }
 0x2d0   : > { %2113 = shalt.err (!%p2110_p3)
}
 0x2d1   : > { %s2167_s30 = smov 128   ;;  %s2168_s28 = smov 8  }
 0x2d2   : > { %1936 = dma.vmem_to_hbm [thread:$0]  (%p2490_p0), %s2419_s14, 256, %s2425_s9, %s1045_s29, %s2167_s30, %s2167_s30, %s2168_s28  }
 0x2d3 PF: > { %s1073_s20 = sand.u32 1, %s2144_s24   ;;  %p2491_p7 = scmp.ne.s32.totalorder %s2481_s8, 0 }
 0x2d4   : > { %p2492_p9 = scmp.ge.s32.totalorder %s2156_s27, 2  ;;  %s1074_s11 = scalar_lea.sflag [#allocation6], %s1073_s20 }
 0x2d6   : > { %p1950_p12 = pnand %p2492_p9, %p2491_p7 }
 0x2d8   : > { %2139 = dma.done.wait (!%p1950_p12), %s1074_s11, 256  }
 0x2d9   : > { %2141 = vsyncadd (!%p1950_p12), %s1074_s11, 4294967040  ;;  %p21_p2 = scmp.ge.s32.totalorder %s2319_s13, 4   ;;  %s2493_s24 = smov %s2148_s25 }
 0x2da   : > { %s2494_s25 = smov %s2152_s26  ;;  %s2495_s26 = smov %s2335_s17 }
 0x2db   : > { %s2496_s27 = smov %s2319_s13  ;;  %23 = sbr.rel (!%p21_p2) target bundleno = 6 (0x6), region = 105 }
 0x2e2   :  { %1079 = vsyncpa [#allocation5], 1 }
 0x2e3   :  { %1081 = vsyncpa [#allocation5 + $0x1], 1 }
 0x2e4   :  { %1082 = vsyncpa [#allocation8], 1 }
 0x2e5   :  { %1083 = vsyncpa [#allocation6], 1 }
 0x2e6   :  { %1085 = vsyncpa [#allocation6 + $0x1], 1 }

</bundles_post_ra>
